<compile_context>
chip_gen: v6e
topology: v6e:2x2x1
jax: 0.10.0
libtpu: 0.0.40
codegen_flags: <defaults>
</compile_context>

<pallas_src>
import functools
import math

import jax
import jax.numpy as jnp
from jax.experimental import pallas as pl
from jax.experimental.pallas import tpu as pltpu


def _smooth_l1(n, *, beta, inv_2beta, half_beta):
    # n = |input - target|; beta / inv_2beta / half_beta are compile-time floats.
    if beta < 1e-5:
        return n
    return jnp.where(n < beta, inv_2beta * (n * n), n - half_beta)


def _wsl1_kernel(x_ref, t_ref, o_ref, *, beta, inv_2beta, half_beta):
    x = x_ref[...].astype(jnp.float32)
    t = t_ref[...].astype(jnp.float32)
    t = jnp.where(jnp.isnan(t), x, t)
    o_ref[...] = _smooth_l1(jnp.abs(x - t), beta=beta, inv_2beta=inv_2beta,
                            half_beta=half_beta)


def _wsl1_kernel_weighted(x_ref, t_ref, w_ref, o_ref, *, beta, inv_2beta,
                          half_beta, codes):
    x = x_ref[...].astype(jnp.float32)
    t = t_ref[...].astype(jnp.float32)
    t = jnp.where(jnp.isnan(t), x, t)
    loss = _smooth_l1(jnp.abs(x - t), beta=beta, inv_2beta=inv_2beta,
                      half_beta=half_beta)

    # Expand per-anchor weights (tm, p) -> (tm, lanes = p*codes) on the
    # otherwise-idle MXU.  The 0/1 expansion matrix is built in-kernel (VPU
    # iota + compares, hides under the DMA) so there is no extra HBM stream or
    # double buffer for it.  precision=HIGHEST keeps the weight multiply exact
    # f32 (each output element is a single 1.0 * w product).
    p = w_ref.shape[-1]
    lanes = loss.shape[-1]
    lane_idx = jax.lax.broadcasted_iota(jnp.int32, (p, lanes), 1)
    row_idx = jax.lax.broadcasted_iota(jnp.int32, (p, lanes), 0)
    expand = ((lane_idx >= row_idx * codes)
              & (lane_idx < (row_idx + 1) * codes)).astype(jnp.float32)
    w_full = jnp.dot(w_ref[...].astype(jnp.float32), expand,
                     preferred_element_type=jnp.float32,
                     precision=jax.lax.Precision.HIGHEST)
    o_ref[...] = loss * w_full


def _sublane_multiple(dtype) -> int:
    # f32 -> 8 sublanes, bf16/f16 -> 16, int8/fp8 -> 32.
    return max(8, 32 // jnp.dtype(dtype).itemsize)


class WeightedSmoothL1Loss:
    """JAX/Pallas port of the PyTorch WeightedSmoothL1Loss module (forward only)."""

    def __init__(self, beta: float = 1.0 / 9.0, code_weights=None):
        self.beta = float(beta)
        if code_weights is not None:
            # Kept for parity with the PyTorch module; unused in forward() there too.
            self.code_weights = jnp.asarray(code_weights, dtype=jnp.float32)
        else:
            self.code_weights = None

    def _const_kwargs(self):
        beta = self.beta
        if beta < 1e-5:
            return dict(beta=beta, inv_2beta=0.0, half_beta=0.0)
        return dict(beta=beta, inv_2beta=0.5 / beta, half_beta=0.5 * beta)

    @staticmethod
    def _tile_rows(m, lanes, block_bytes, sub):
        """Rows per block: ~block_bytes of f32, a multiple of `sub` sublanes,
        capped so the grid has >= 2 steps whenever the array allows it
        (megacore split on v7x, real pipelining everywhere)."""
        tm = (block_bytes // (lanes * 4)) // sub * sub
        tm = max(tm, sub)
        if m > sub:
            half = -(-((m + 1) // 2) // sub) * sub   # ceil(m/2) rounded up to sub
            tm = min(tm, half)
        return min(tm, m)

    def __call__(self, inp, target, weights=None, *,
                 block_bytes=2 << 20, vmem_limit_bytes=48 << 20):
        assert inp.shape == target.shape and inp.ndim == 3
        B, A, C = inp.shape
        rows = B * A
        if weights is not None:
            assert weights.shape[0] == B and weights.shape[1] == A

        consts = self._const_kwargs()

        # Smallest multiple of 128 that C divides -> each lane-row holds a whole
        # number of anchors (required for the packed per-anchor weight layout).
        lanes = 128 * (C // math.gcd(C, 128))
        p = lanes // C                     # anchors per lane-row

        # dtype-aware sublane rounding (8 for f32, 16 for bf16, 32 for int8).
        sub = max(_sublane_multiple(inp.dtype), _sublane_multiple(target.dtype), 8)
        if weights is not None:
            sub = max(sub, _sublane_multiple(weights.dtype))

        # Pad the anchor dimension so rows % p == 0; then rows_p * C is a
        # multiple of `lanes` and the lane-dense packed layout works for any C.
        # (No-op for typical PointPillar shapes.)
        pad_rows = (-rows) % p
        rows_p = rows + pad_rows
        m = rows_p // p

        x2 = inp.reshape(rows, C)
        t2 = target.reshape(rows, C)
        if pad_rows:
            x2 = jnp.pad(x2, ((0, pad_rows), (0, 0)))
            t2 = jnp.pad(t2, ((0, pad_rows), (0, 0)))
        x2 = x2.reshape(m, lanes)          # free row-major reshapes
        t2 = t2.reshape(m, lanes)

        tm = self._tile_rows(m, lanes, block_bytes, sub)
        grid = (pl.cdiv(m, tm),)

        data_spec = pl.BlockSpec((tm, lanes), lambda i: (i, 0))
        out_spec = pl.BlockSpec((tm, lanes), lambda i: (i, 0))
        out_shape = jax.ShapeDtypeStruct((m, lanes), jnp.float32)
        params = pltpu.CompilerParams(
            dimension_semantics=("parallel",),
            vmem_limit_bytes=vmem_limit_bytes,
        )

        if weights is None:
            loss2 = pl.pallas_call(
                functools.partial(_wsl1_kernel, **consts),
                out_shape=out_shape,
                grid=grid,
                in_specs=[data_spec, data_spec],
                out_specs=out_spec,
                compiler_params=params,
            )(x2, t2)
        else:
            w2 = weights.reshape(rows)
            if pad_rows:
                w2 = jnp.pad(w2, (0, pad_rows))
            w2 = w2.reshape(m, p)          # per-anchor, NOT pre-broadcast (1/C HBM traffic)
            w_spec = pl.BlockSpec((tm, p), lambda i: (i, 0))
            loss2 = pl.pallas_call(
                functools.partial(_wsl1_kernel_weighted, codes=C, **consts),
                out_shape=out_shape,
                grid=grid,
                in_specs=[data_spec, data_spec, w_spec],
                out_specs=out_spec,
                compiler_params=params,
            )(x2, t2, w2)

        loss = loss2.reshape(rows_p, C)
        if pad_rows:
            loss = loss[:rows]
        return loss.reshape(B, A, C)


def _reference(inp, target, weights, beta):
    target = jnp.where(jnp.isnan(target), inp, target)
    n = jnp.abs(inp.astype(jnp.float32) - target.astype(jnp.float32))
    if beta < 1e-5:
        loss = n
    else:
        loss = jnp.where(n < beta, 0.5 * n * n / beta, n - 0.5 * beta)
    if weights is not None:
        loss = loss * weights.astype(jnp.float32)[..., None]
    return loss.astype(jnp.float32)


if __name__ == "__main__":
    key = jax.random.PRNGKey(0)
    k1, k2, k3, k4 = jax.random.split(key, 4)

    # (B, #anchors, #codes) — PointPillar regression-loss layout.
    B, A, C = 2, 256, 8
    inp = jax.random.normal(k1, (B, A, C), dtype=jnp.float32)
    target = jax.random.normal(k2, (B, A, C), dtype=jnp.float32)
    nan_mask = jax.random.bernoulli(k3, p=0.1, shape=(B, A, C))
    target = jnp.where(nan_mask, jnp.nan, target)   # exercise the isnan path
    weights = jax.random.uniform(k4, (B, A), dtype=jnp.float32)

    loss_mod = WeightedSmoothL1Loss(beta=1.0 / 9.0, code_weights=[1.0] * C)

    # Weighted, lane-dense path (pad-free).
    out = jax.block_until_ready(loss_mod(inp, target, weights))
    ref = _reference(inp, target, weights, 1.0 / 9.0)
    assert out.shape == (B, A, C)
    assert jnp.allclose(out, ref, atol=1e-5, rtol=1e-5), "mismatch (weighted)"

    # Unweighted path.
    out_nw = jax.block_until_ready(loss_mod(inp, target, None))
    ref_nw = _reference(inp, target, None, 1.0 / 9.0)
    assert jnp.allclose(out_nw, ref_nw, atol=1e-5, rtol=1e-5), "mismatch (no weights)"

    # Awkward shape (C=7, few anchors) exercises the anchor-padding path
    # while still using the packed-weight kernel.
    B2, A2, C2 = 2, 30, 7
    inp2 = jax.random.normal(k1, (B2, A2, C2), dtype=jnp.float32)
    tgt2 = jax.random.normal(k2, (B2, A2, C2), dtype=jnp.float32)
    w2 = jax.random.uniform(k4, (B2, A2), dtype=jnp.float32)
    out2 = jax.block_until_ready(loss_mod(inp2, tgt2, w2))
    ref2 = _reference(inp2, tgt2, w2, 1.0 / 9.0)
    assert out2.shape == (B2, A2, C2)
    assert jnp.allclose(out2, ref2, atol=1e-5, rtol=1e-5), "mismatch (padded C=7)"

    # bf16 inputs (dtype-aware sublane rounding; cast to f32 in-kernel).
    out_bf = jax.block_until_ready(
        loss_mod(inp.astype(jnp.bfloat16), target.astype(jnp.bfloat16), weights))
    ref_bf = _reference(inp.astype(jnp.bfloat16), target.astype(jnp.bfloat16),
                        weights, 1.0 / 9.0)
    assert jnp.allclose(out_bf, ref_bf, atol=1e-5, rtol=1e-5), "mismatch (bf16)"

    # beta < 1e-5 -> pure L1 branch.
    l1_mod = WeightedSmoothL1Loss(beta=0.0)
    out3 = jax.block_until_ready(l1_mod(inp, target, weights))
    ref3 = _reference(inp, target, weights, 0.0)
    assert jnp.allclose(out3, ref3, atol=1e-5, rtol=1e-5), "mismatch (L1 branch)"

    print("KERNEL_OK")
</pallas_src>

<mosaic_0001>
module attributes {stable_mosaic.version = 11 : i64} {
  func.func @_wsl1_kernel_weighted(%arg0: i32, %arg1: memref<16x128xf32, #tpu.memory_space<vmem>>, %arg2: memref<16x128xf32, #tpu.memory_space<vmem>>, %arg3: memref<16x16xf32, #tpu.memory_space<vmem>>, %arg4: memref<16x128xf32, #tpu.memory_space<vmem>>) attributes {dimension_semantics = [#tpu.dimension_semantics<parallel>], iteration_bounds = array<i64: 2>, scalar_prefetch = 0 : i64, scratch_operands = 0 : i64, tpu.core_type = #tpu.core_type<tc>, window_params = [{transform_indices = @transform_0, window_bounds = array<i64: 16, 128>}, {transform_indices = @transform_1, window_bounds = array<i64: 16, 128>}, {transform_indices = @transform_2, window_bounds = array<i64: 16, 16>}, {transform_indices = @transform_3, window_bounds = array<i64: 16, 128>}]} {
    %c0 = arith.constant 0 : index
    %c0_0 = arith.constant 0 : index
    %0 = vector.load %arg1[%c0, %c0_0] : memref<16x128xf32, #tpu.memory_space<vmem>>, vector<16x128xf32>
    %c0_1 = arith.constant 0 : index
    %c0_2 = arith.constant 0 : index
    %1 = vector.load %arg2[%c0_1, %c0_2] : memref<16x128xf32, #tpu.memory_space<vmem>>, vector<16x128xf32>
    %2 = arith.cmpf one, %1, %1 : vector<16x128xf32>
    %3 = arith.select %2, %0, %1 : vector<16x128xi1>, vector<16x128xf32>
    %4 = arith.subf %0, %3 : vector<16x128xf32>
    %5 = math.absf %4 : vector<16x128xf32>
    %cst = arith.constant 0.111111112 : f32
    %6 = vector.broadcast %cst : f32 to vector<16x128xf32>
    %7 = arith.cmpf olt, %5, %6 : vector<16x128xf32>
    %8 = arith.mulf %5, %5 : vector<16x128xf32>
    %cst_3 = arith.constant 4.500000e+00 : f32
    %9 = vector.broadcast %cst_3 : f32 to vector<16x128xf32>
    %10 = arith.mulf %9, %8 : vector<16x128xf32>
    %cst_4 = arith.constant 0.055555556 : f32
    %11 = vector.broadcast %cst_4 : f32 to vector<16x128xf32>
    %12 = arith.subf %5, %11 : vector<16x128xf32>
    %13 = arith.select %7, %10, %12 : vector<16x128xi1>, vector<16x128xf32>
    %14 = tpu.iota {dimensions = array<i32: 1>} : vector<16x128xi32>
    %15 = tpu.iota {dimensions = array<i32: 0>} : vector<16x128xi32>
    %c8_i32 = arith.constant 8 : i32
    %16 = vector.broadcast %c8_i32 : i32 to vector<16x128xi32>
    %17 = arith.muli %15, %16 : vector<16x128xi32>
    %18 = arith.cmpi sge, %14, %17 : vector<16x128xi32>
    %c1_i32 = arith.constant 1 : i32
    %19 = vector.broadcast %c1_i32 : i32 to vector<16x128xi32>
    %20 = arith.addi %15, %19 : vector<16x128xi32>
    %c8_i32_5 = arith.constant 8 : i32
    %21 = vector.broadcast %c8_i32_5 : i32 to vector<16x128xi32>
    %22 = arith.muli %20, %21 : vector<16x128xi32>
    %23 = arith.cmpi slt, %14, %22 : vector<16x128xi32>
    %24 = arith.andi %18, %23 : vector<16x128xi1>
    %25 = arith.extui %24 : vector<16x128xi1> to vector<16x128xi32>
    %26 = arith.sitofp %25 : vector<16x128xi32> to vector<16x128xf32>
    %c0_6 = arith.constant 0 : index
    %c0_7 = arith.constant 0 : index
    %27 = vector.load %arg3[%c0_6, %c0_7] : memref<16x16xf32, #tpu.memory_space<vmem>>, vector<16x16xf32>
    %cst_8 = arith.constant dense<0.000000e+00> : vector<16x128xf32>
    %28 = tpu.matmul %27, %26, %cst_8 {dimension_numbers = #tpu.dot_dimension_numbers<[1], [0], [0], [1], [0, 0, 1, 1], [], []>, precision = #tpu.contract_precision<fp32>} : vector<16x16xf32>, vector<16x128xf32>, vector<16x128xf32> -> vector<16x128xf32>
    %29 = arith.mulf %13, %28 : vector<16x128xf32>
    %c0_9 = arith.constant 0 : index
    %c0_10 = arith.constant 0 : index
    %30 = vector.load %arg4[%c0_9, %c0_10] : memref<16x128xf32, #tpu.memory_space<vmem>>, vector<16x128xf32>
    tpu.vector_store %arg4[%c0_9, %c0_10], %29 {strides = array<i32>} : memref<16x128xf32, #tpu.memory_space<vmem>>, vector<16x128xf32>,
    return
  }
  func.func @transform_0(%arg0: i32) -> (i32, i32) {
    %c0_i32 = arith.constant 0 : i32
    %c0_i32_0 = arith.constant 0 : i32
    return %arg0, %c0_i32 : i32, i32
  }
  func.func @transform_1(%arg0: i32) -> (i32, i32) {
    %c0_i32 = arith.constant 0 : i32
    %c0_i32_0 = arith.constant 0 : i32
    return %arg0, %c0_i32 : i32, i32
  }
  func.func @transform_2(%arg0: i32) -> (i32, i32) {
    %c0_i32 = arith.constant 0 : i32
    %c0_i32_0 = arith.constant 0 : i32
    return %arg0, %c0_i32 : i32, i32
  }
  func.func @transform_3(%arg0: i32) -> (i32, i32) {
    %c0_i32 = arith.constant 0 : i32
    %c0_i32_0 = arith.constant 0 : i32
    return %arg0, %c0_i32 : i32, i32
  }
}

</mosaic_0001>

<bundles_post_ra>
// kernel: tpu_custom_call.1
= control target key start
LH: loop header
LB: loop body
LE: loop exit
PB: predicated region body
PF: predicated region fallthrough
CT: control target
= control target key end

     0   :  { %8 = vsyncpa [#allocation3], 0  ;;  %s1386_s0 = inlined_call_operand.vmem [shape: f32[32,128], index: 0, kind: input, shape index: {}]   ;;  %s1387_s1 = inlined_call_operand.hbm [shape: f32[32,128], index: 1, kind: input, shape index: {}]   ;;  %s1388_s2 = inlined_call_operand.vmem [shape: f32[32,16], index: 2, kind: input, shape index: {}]   ;;  %s1389_s3 = inlined_call_operand.hbm [shape: f32[32,128], index: 3, kind: output, shape index: {}]  }
   0x1   :  { %10 = vsyncpa [#allocation3 + $0x1], 0 }
   0x2   :  { %11 = vsyncpa [#allocation4], 0 }
   0x3   :  { %13 = vsyncpa [#allocation4 + $0x1], 0  ;;  %s1174_s12 = smov 0   ;;  %s1176_s13 = smov 0  }
   0x4   :  { %s1178_s14 = smov 0   ;;  %s1180_s15 = smov 0  }
   0x5 LB: > { %s1195_s16 = sadd.s32 4294967295, %s1144_s15   ;;  %s904_s17 = sadd.s32 4294967294, %s1144_s15   ;;  %s1144_s15 = sphi %s1180_s15, %s1408_s15   ;;  %s1140_s14 = sphi %s1178_s14, %s1407_s14   ;;  %s1136_s13 = sphi %s1176_s13, %s1406_s13   ;;  %s1132_s12 = sphi %s1174_s12, %s1405_s12  }
   0x6   : > { %s1199_s18 = sadd.s32 1, %s1144_s15   ;;  %s52_s19 = sadd.s32 1, %s1140_s14 }
   0x7   : > { %s49_s20 = ssub.s32 %s1144_s15, %s1199_s18  ;;  %p59_p0 = scmp.ne.s32.totalorder %s1140_s14, %s1136_s13 }
   0x8   : > { %p50_p1 = scmp.eq.s32.totalorder %s49_s20, 0  ;;  %p60_p2 = scmp.eq.s32.totalorder %s1144_s15, 0 }
   0x9   : > { %p65_p3 = scmp.ne.s32.totalorder %s1136_s13, %s1132_s12  ;;  %p66_p4 = scmp.eq.s32.totalorder %s1195_s16, 0 }
   0xa   : > { %s1211_s21 = scalar_select %p50_p1, %s1140_s14, %s52_s19  }
   0xb   : > { %p1213_p5 = por %p60_p2, %p59_p0  ;;  %p1217_p6 = por %p66_p4, %p65_p3 }
   0xc   : > { %p115_p7 = scmp.eq.s32.totalorder %s1195_s16, 1  ;;  %p121_p8 = scmp.eq.s32.totalorder %s904_s17, 1 }
   0xd   : > { %s1393_s23 = scalar_select %p1217_p6, 1, 0 }
   0xe   : > { %p1012_p10 = scmp.lt.s32.totalorder %s1144_s15, 2  ;;  %p1224_p11 = por %p115_p7, %p59_p0 }
   0xf   : > { %p1228_p12 = por %p121_p8, %p65_p3  ;;  %s150_s26 = sand.u32 1, %s1140_s14  }
  0x10   : > { %s1394_s24 = scalar_select %p1224_p11, 1, 0 }
  0x11   : > { %s1395_s25 = scalar_select %p1228_p12, 1, 0 }
  0x12   : > { %s932_s27 = sshll.u32 %s1144_s15, 8  ;;  %s907_s28 = sshll.u32 %s150_s26, 4 }
  0x13   : > { %s1237_s4 = scalar_lea.hbm %s1387_s1, %s932_s27  ;;  %s154_s5 = scalar_lea.vmem [#allocation2], %s907_s28 }
  0x14   : > { %s161_s6 = sshll.u32 %s154_s5, 4  ;;  %p1241_p13 = pnand %p1012_p10, %p1213_p5  ;;  %s1245_s6 = int_to_ptr.vmem [resolvable:$true] %s161_s6 }
  0x15   : > { %s1247_s8 = scalar_lea.sflag [#allocation3], %s150_s26  ;;  %s1052_s9 = scalar_lea.hbm %s1237_s4, 256 }
  0x16   : > { %p1053_p0 = scmp.ne.s32.totalorder %s1237_s4, %s1052_s9  ;;  %p1054_p1 = pneg %p1241_p13 }
  0x17   : > { %s1057_s17 = scalar_lea.hbm %s1387_s1, 512  ;;  %p1058_p4 = scmp.lt.s32.totalorder %s1237_s4, %s1387_s1 }
  0x18   : > { %p1055_p2 = pnand %p1054_p1, %p1053_p0  ;;  %p1059_p5 = scmp.lt.s32.totalorder %s1057_s17, %s1052_s9 }
  0x1a   : > { %p1056_p3 = pneg %p1055_p2  ;;  %p1060_p7 = por %p1059_p5, %p1058_p4 }
  0x1c   : > { %p1061_p8 = pnand %p1060_p7, %p1056_p3 }
  0x1e   : > { %1064 = shalt.err (!%p1061_p8)
}
  0x1f   : > { %s1065_s22 = scalar_lea.vmem %s1245_s6, 256  ;;  %s1146_s26 = smov [#allocation2]  }
  0x20   : > { %p1066_p10 = scmp.ne.s32.totalorder %s1245_s6, %s1065_s22  ;;  %s1070_s27 = sshll.u32 %s1146_s26, 4  ;;  %s1071_s27 = int_to_ptr.vmem [resolvable:$false] %s1070_s27 }
  0x21   : > { %s1072_s28 = scalar_lea.vmem %s1071_s27, 512  ;;  %p1073_p2 = scmp.lt.s32.totalorder %s1245_s6, %s1071_s27 }
  0x22   : > { %p1068_p9 = pnand %p1066_p10, %p1054_p1  ;;  %p1074_p12 = scmp.lt.s32.totalorder %s1072_s28, %s1065_s22 }
  0x24   : > { %p1069_p0 = pneg %p1068_p9  ;;  %p1075_p11 = por %p1074_p12, %p1073_p2 }
  0x26   : > { %p1076_p6 = pnand %p1075_p11, %p1069_p0 }
  0x28   : > { %1079 = shalt.err (!%p1076_p6)
}
  0x29   : > { %s1147_s29 = smov 128   ;;  %s1148_s30 = smov 8  }
  0x2a   : > { %1007 = dma.hbm_to_vmem [thread:$0]  (!%p1241_p13), %s1237_s4, 256, %s1245_s6, %s1247_s8, %s1147_s29, %s1147_s29, %s1148_s30  }
  0x2b   : > { %p910_p9 = scmp.ge.s32.totalorder %s1144_s15, 1  ;;  %p178_p1 = scmp.lt.s32.totalorder %s1144_s15, 3 }
  0x2d   : > { %p179_p3 = pnand %p910_p9, %p178_p1 }
  0x2e   : > { %s1271_s5 = sand.u32 (!%p179_p3), 1, %s1136_s13   ;;  %p1397_p6 = scmp.ne.s32.totalorder (!%p179_p3), %s1393_s23, 0 }
  0x2f   : > { %182 = sbr.rel (%p179_p3) target bundleno = 300 (0x12c), region = 32  ;;  %s911_s9 = sshll.u32 (!%p179_p3), %s1271_s5, 4 }
  0x30   : > { %s185_s10 = scalar_lea.sflag (!%p179_p3), [#allocation3], %s1271_s5  ;;  %s1277_s11 = scalar_lea.vmem (!%p179_p3), [#allocation2], %s911_s9 }
  0x34   : > { %1123 = dma.done.wait (%p1397_p6), %s185_s10, 256  }
  0x35   : > { %1125 = vsyncadd (%p1397_p6), %s185_s10, 4294967040  ;;  %v257_v0 = vlaneseq  ;;  %s913_s4 = sshll.u32 %s1195_s16, 1  ;;  %vm280_vm0 = vcmask 130048   ;;  %v1149_v17 = vmov 0.0   ;;  %v1150_v22 = vmov 1.0   ;;  %v238_v38 = vld [vmem:[%s1277_s11 + $0x8] sm:$0xff] }
  0x36   : > { %p222_p11 = scmp.lt.s32.totalorder %s913_s4, 3  ;;  %v237_v39 = vld [vmem:[%s1277_s11] sm:$0xff]  ;;  %vm240_vm7 = vcmp.ne.f32.partialorder %v238_v38, %v238_v38  ;;  %s220_s22 = scalar_lea.vmem [#allocation5], %s911_s9 }
  0x37   : > { %v260_v1 = vshrl.u32 %v257_v0, 7  ;;  %v258_v2 = vand.u32 127, %v257_v0  ;;  %vm239_vm8 = vcmp.ne.f32.partialorder %v237_v39, %v237_v39  ;;  %s807_s26 = sshll.u32 %s220_s22, 4  ;;  %s933_s27 = sshll.u32 %s1195_s16, 8  ;;  %s1338_s26 = int_to_ptr.vmem [resolvable:$true] %s807_s26 }
  0x38   : > { %s1410_s4 = smov (!%p222_p11, %s913_s4), 3  ;;  %s1343_s30 = scalar_lea.hbm %s1389_s3, %s933_s27 }
  0x39   : > { %v261_v3 = vadd.s32 8, %v260_v1  ;;  %v262_v4 = vmul.u32 8, %v260_v1  ;;  %v266_v5 = vadd.s32 1, %v260_v1  ;;  %s914_s6 = sshll.u32 %s1410_s4, 3  ;;  %s794_s9 = scalar_lea.sflag [#allocation4], %s1271_s5 }
  0x3a   : > { %s232_s8 = scalar_lea.vmem %s1388_s2, %s914_s6  ;;  %s225_s20 = scalar_lea.vmem %s1386_s0, %s914_s6 }
  0x3b   : > { %v263_v6 = vmul.u32 8, %v261_v3  ;;  %v267_v7 = vadd.s32 1, %v261_v3  ;;  %vm264_vm1 = vcmp.ge.s32.totalorder %v258_v2, %v262_v4  ;;  %v268_v8 = vmul.u32 8, %v266_v5  ;;  %v278_v9 = vld [vmem:[%s232_s8] sm:$0xff]  ;;  %v279_v11 = vld [vmem:[%s232_s8 + $0x8] sm:$0xff]  ;;  %s1080_s10 = scalar_lea.vmem %s1338_s26, 256 }
  0x3c   : > { %v282_v12 = vsel %vm280_vm0, %v278_v9, 0  ;;  %v285_v14 = vsel %vm280_vm0, %v279_v11, 0  ;;  %v236_v40 = vld [vmem:[%s225_s20 + $0x8] sm:$0xff]  ;;  %v235_v41 = vld [vmem:[%s225_s20] sm:$0xff]  ;;  %p1081_p12 = scmp.ne.s32.totalorder %s1338_s26, %s1080_s10  ;;  %p1402_p13 = scmp.ne.s32.totalorder %s1394_s24, 0 }
  0x3d   : > { %vm265_vm2 = vcmp.ge.s32.totalorder %v258_v2, %v263_v6  ;;  %v269_v10 = vmul.u32 8, %v267_v7  ;;  %vm270_vm3 = vcmp.lt.s32.totalorder %v258_v2, %v268_v8  ;;  %v354_v15 = vand.u32 4294901760, %v282_v12  ;;  %s1151_s16 = smov [#allocation5]  }
  0x3e   : > { %vm1292_vm4 = vmand %vm264_vm1, %vm270_vm3  ;;  %v364_v16 = vand.u32 4294901760, %v285_v14  ;;  %v242_v42 = vsel %vm240_vm7, %v236_v40, %v238_v38  ;;  %v241_v43 = vsel %vm239_vm8, %v235_v41, %v237_v39  ;;  %p1082_p4 = pnand %p1081_p12, %p1402_p13  ;;  %s1084_s11 = sshll.u32 %s1151_s16, 4  ;;  %s1085_s11 = int_to_ptr.vmem [resolvable:$false] %s1084_s11 }
  0x3f   : > { %vm271_vm5 = vcmp.lt.s32.totalorder %v258_v2, %v269_v10  ;;  %v919_v18 = vsel %vm1292_vm4, 1.0, %v1149_v17  ;;  %v355_v20 = vsub.f32 %v282_v12, %v354_v15  ;;  %969 = vmatprep.mubr.f32.mxu1 %v354_v15  ;;  %v244_v44 = vsub.f32 %v236_v40, %v242_v42  ;;  %s1086_s4 = scalar_lea.vmem %s1085_s11, 512  ;;  %p1087_p7 = scmp.lt.s32.totalorder %s1338_s26, %s1085_s11 }
  0x40   : > { %vm1298_vm6 = vmand %vm265_vm2, %vm271_vm5  ;;  %v411_v21 = vsub.f32 %v919_v18, %v919_v18  ;;  %v365_v24 = vsub.f32 %v285_v14, %v364_v16  ;;  %v243_v46 = vsub.f32 %v235_v41, %v241_v43  ;;  %p1083_p5 = pneg %p1082_p4  ;;  %p1088_p8 = scmp.lt.s32.totalorder %s1086_s4, %s1080_s10 }
  0x41   : > { %958 = vmatprep.subr.msk.mxu0 %vm1298_vm6, %v1150_v22  ;;  %v920_v23 = vsel %vm1298_vm6, 1.0, %v1149_v17  ;;  %v356_v25 = vand.u32 4294901760, %v355_v20  ;;  %v246_v48 = vand.u32 2147483647, %v244_v44 }
  0x42   : > { %959 = vmatpush3.msk.msra.mxu0 %vm1298_vm6, %v1150_v22  ;;  %v404_v26 = vsub.f32 %v920_v23, %v920_v23  ;;  %v412_v27 = vand.u32 4294901760, %v411_v21  ;;  %v366_v28 = vand.u32 4294901760, %v365_v24  ;;  %v245_v50 = vand.u32 2147483647, %v243_v46  ;;  %p1089_p10 = por %p1088_p8, %p1087_p7 }
  0x43   : > { %960 = vmatprep.subr.msk.mxu0 %vm1292_vm4, %v1150_v22  ;;  %v357_v29 = vsub.f32 %v355_v20, %v356_v25  ;;  %v250_v54 = vmul.f32 %v246_v48, %v246_v48  ;;  %v918_v63 = vadd.f32 -0.055555556, %v246_v48  ;;  %vm248_vm9 = vcmp.lt.f32.partialorder %v246_v48, 0.11111111 }
  0x44   : > { %961 = vmatpush3.msk.msra.mxu0 %vm1292_vm4, %v1150_v22  ;;  %v405_v30 = vand.u32 4294901760, %v404_v26  ;;  %v413_v31 = vsub.f32 %v411_v21, %v412_v27  ;;  %v367_v32 = vsub.f32 %v365_v24, %v366_v28  ;;  %v249_v58 = vmul.f32 %v245_v50, %v245_v50  ;;  %p1090_p0 = pnand %p1089_p10, %p1083_p5 }
  0x45   : > { %972 = vmatprep.subr.mxu0 %v404_v26  ;;  %v358_v33 = vand.u32 4294901760, %v357_v29  ;;  %v252_v62 = vmul.f32 4.5, %v250_v54  ;;  %v917_v5 = vadd.f32 -0.055555556, %v245_v50  ;;  %vm247_vm10 = vcmp.lt.f32.partialorder %v245_v50, 0.11111111 }
  0x46   : > { %v406_v34 = vsub.f32 %v404_v26, %v405_v30  ;;  %v368_v35 = vand.u32 4294901760, %v367_v32  ;;  %v414_v37 = vand.u32 4294901760, %v413_v31  ;;  %v251_v4 = vmul.f32 4.5, %v249_v58 }
  0x47   : > { %962 = vmatprep.mubr.f32.mxu0 %v358_v33  ;;  %v256_v8 = vsel %vm248_vm9, %v252_v62, %v918_v63 }
  0x48   : > { %v407_v36 = vand.u32 4294901760, %v406_v34  ;;  %963 = vmatmul.mubr.f32.vlgmr.msra.gmra.mxu0 %v368_v35  ;;  %v255_v11 = vsel %vm247_vm10, %v251_v4, %v917_v5 }
  0x49   : > { %973 = vmatpush3.msra.mxu0 %v404_v26  ;;  %976 = vmatprep.mubr.f32.mxu0 %v355_v20 }
  0x4a   : > { %965 = vmatprep.subr.mxu1 %v407_v36  ;;  %974 = vmatprep.subr.mxu0 %v411_v21 }
  0x4b   : > { %966 = vmatpush3.msra.mxu1 %v407_v36  ;;  %975 = vmatpush3.msra.mxu0 %v411_v21 }
  0x4c   : > { %967 = vmatprep.subr.mxu1 %v414_v37  ;;  %977 = vmatmul.mubr.f32.vlgmr.msra.gmra.mxu0 %v365_v24 }
  0x4d   : > { %968 = vmatpush3.msra.mxu1 %v414_v37  ;;  %986 = vmatprep.subr.mxu0 %v405_v30 }
  0x4e   : > { %970 = vmatmul.mubr.f32.vlgmr.msra.gmra.mxu1 %v364_v16  ;;  %979 = vmatprep.subr.msk.mxu1 %vm1298_vm6, %v1150_v22 }
  0x4f   : > { %980 = vmatpush3.msk.msra.mxu1 %vm1298_vm6, %v1150_v22  ;;  %987 = vmatpush3.msra.mxu0 %v405_v30 }
  0x50   : > { %981 = vmatprep.subr.msk.mxu1 %vm1292_vm4, %v1150_v22  ;;  %983 = vmatprep.mubr.f32.mxu1 %v356_v25 }
  0x51   : > { %982 = vmatpush3.msk.msra.mxu1 %vm1292_vm4, %v1150_v22  ;;  %988 = vmatprep.subr.mxu0 %v412_v27 }
  0x52   : > { %984 = vmatmul.mubr.f32.vlgmr.msra.gmra.mxu1 %v366_v28  ;;  %989 = vmatpush3.msra.mxu0 %v412_v27 }
  0x53   : > { %990 = vmatprep.mubr.f32.mxu0 %v354_v15  ;;  %993 = vmatprep.subr.msk.mxu1 %vm1298_vm6, %v1150_v22 }
  0x54   : > { %991 = vmatmul.mubr.f32.vlgmr.msra.gmra.mxu0 %v364_v16  ;;  %994 = vmatpush3.msk.msra.mxu1 %vm1298_vm6, %v1150_v22 }
  0x55   : > { %995 = vmatprep.subr.msk.mxu1 %vm1292_vm4, %v1150_v22  ;;  %997 = vmatprep.mubr.f32.mxu1 %v354_v15 }
  0x56   : > { %996 = vmatpush3.msk.msra.mxu1 %vm1292_vm4, %v1150_v22 }
  0x57   : > { %998 = vmatmul.mubr.f32.vlgmr.msra.gmra.mxu1 %v364_v16 }
 0x108   : > { %v964_v45 = vpop.f32.mrf.mxu0 }
 0x10a   : > { %v360_v47 = vpop.f32.mrf.mxu0 }
 0x10c   : > { %v978_v52 = vpop.f32.mrf.mxu0 }
 0x10e   : > { %v971_v49 = vpop.f32.mrf.mxu1  ;;  %v533_v57 = vpop.f32.mrf.mxu0 }
 0x10f   : > { %v458_v51 = vadd.f32 %v971_v49, %v964_v45 }
 0x110   : > { %v451_v53 = vpop.f32.mrf.mxu1 }
 0x111   : > { %v541_v55 = vadd.f32 %v978_v52, %v458_v51  ;;  %v452_v56 = vadd.f32 %v451_v53, %v360_v47 }
 0x112   : > { %v985_v60 = vpop.f32.mrf.mxu1 }
 0x113   : > { %v534_v59 = vadd.f32 %v533_v57, %v452_v56  ;;  %v624_v61 = vadd.f32 %v985_v60, %v541_v55 }
 0x114   : > { %v992_v0 = vpop.f32.mrf.mxu0  ;;  %v615_v1 = vpop.f32.mrf.mxu1 }
 0x115   : > { %v707_v2 = vadd.f32 %v992_v0, %v624_v61  ;;  %v616_v3 = vadd.f32 %v615_v1, %v534_v59 }
 0x116   : > { %v700_v6 = vpop.f32.mrf.mxu0 }
 0x117   : > { %v701_v7 = vadd.f32 %v700_v6, %v616_v3  ;;  %v999_v9 = vpop.f32.mrf.mxu1 }
 0x118   : > { %v786_v10 = vadd.f32 %v999_v9, %v707_v2 }
 0x119   : > { %v779_v12 = vpop.f32.mrf.mxu1 }
 0x11a   : > { %v790_v13 = vmul.f32 %v786_v10, %v256_v8  ;;  %v780_v14 = vadd.f32 %v779_v12, %v701_v7 }
 0x11c   : > { %792 = vst [vmem:[%s220_s22 + $0x8] sm:$0xff] %v790_v13  ;;  %v789_v15 = vmul.f32 %v780_v14, %v255_v11 }
 0x11e   : > { %791 = vst [vmem:[%s220_s22] sm:$0xff] %v789_v15 }
 0x11f   : > { %1093 = shalt.err (!%p1090_p0)
}
 0x120   : > { %s1094_s6 = scalar_lea.hbm %s1343_s30, 256  ;;  %s1098_s8 = scalar_lea.hbm %s1389_s3, 512 }
 0x121   : > { %p1095_p2 = scmp.ne.s32.totalorder %s1343_s30, %s1094_s6  ;;  %p1099_p3 = scmp.lt.s32.totalorder %s1343_s30, %s1389_s3 }
 0x122   : > { %p1100_p6 = scmp.lt.s32.totalorder %s1098_s8, %s1094_s6 }
 0x123   : > { %p1096_p9 = pnand %p1095_p2, %p1402_p13 }
 0x124   : > { %p1101_p11 = por %p1100_p6, %p1099_p3 }
 0x125   : > { %p1097_p1 = pneg %p1096_p9 }
 0x127   : > { %p1102_p12 = pnand %p1101_p11, %p1097_p1 }
 0x129   : > { %1105 = shalt.err (!%p1102_p12)
}
 0x12a   : > { %s1152_s20 = smov 128   ;;  %s1153_s22 = smov 8  }
 0x12b   : > { %1002 = dma.vmem_to_hbm [thread:$0]  (%p1402_p13), %s1338_s26, 256, %s1343_s30, %s794_s9, %s1152_s20, %s1152_s20, %s1153_s22  }
 0x12c PF: > { %s822_s27 = sand.u32 1, %s1132_s12   ;;  %p1403_p4 = scmp.ne.s32.totalorder %s1395_s25, 0 }
 0x12d   : > { %p1404_p5 = scmp.ge.s32.totalorder %s1144_s15, 2  ;;  %s823_s28 = scalar_lea.sflag [#allocation4], %s822_s27 }
 0x12f   : > { %p1009_p7 = pnand %p1404_p5, %p1403_p4 }
 0x131   : > { %p1010_p8 = pneg %p1009_p7 }
 0x133   : > { %1127 = dma.done.wait (%p1010_p8), %s823_s28, 256  }
 0x134   : > { %1129 = vsyncadd (%p1010_p8), %s823_s28, 4294967040  ;;  %p16_p10 = scmp.ge.s32.totalorder %s1199_s18, 4   ;;  %s1405_s12 = smov %s1136_s13 }
 0x135   : > { %s1406_s13 = smov %s1140_s14  ;;  %s1407_s14 = smov %s1211_s21 }
 0x136   : > { %s1408_s15 = smov %s1199_s18  ;;  %18 = sbr.rel (!%p16_p10) target bundleno = 5 (0x5), region = 83 }
 0x13b   :  { %828 = vsyncpa [#allocation3], 1 }
 0x13c   :  { %830 = vsyncpa [#allocation3 + $0x1], 1 }
 0x13d   :  { %831 = vsyncpa [#allocation4], 1 }
 0x13e   :  { %833 = vsyncpa [#allocation4 + $0x1], 1 }

</bundles_post_ra>
